<compile_context>
chip_gen: v7x
topology: tpu7x:2x2x1
jax: 0.10.0
libtpu: 0.0.40
codegen_flags: <defaults>
</compile_context>

<pallas_src>
import jax
import jax.numpy as jnp
from jax.experimental import pallas as pl
from jax.experimental.pallas import tpu as pltpu


def _round_up(x, m):
    return ((x + m - 1) // m) * m


def _vmem_capacity_bytes():
    """Per-core physical VMEM (128 MiB v5e/v6e, 64 MiB v7x); safe fallback."""
    try:
        return int(pltpu.get_tpu_info().vmem_capacity_bytes)
    except Exception:
        return 64 << 20


# -----------------------------------------------------------------------------
# Kernels
# -----------------------------------------------------------------------------
def _make_resident_kernel(has_residual):
    """Whole FFN per token tile; both weight matrices stay VMEM-resident."""

    def kernel(*refs):
        if has_residual:
            x_ref, w1_ref, b1_ref, w2_ref, b2_ref, res_ref, o_ref = refs
        else:
            x_ref, w1_ref, b1_ref, w2_ref, b2_ref, o_ref = refs
            res_ref = None
        # Matmuls in native operand dtype (bf16 on MXU), f32 accumulation.
        h = jnp.dot(x_ref[...], w1_ref[...], preferred_element_type=jnp.float32)
        # Bias + ReLU in f32, then immediately narrow h to the weight dtype so
        # the (TM, Hp) intermediate costs half the VMEM.
        h = jnp.maximum(h + b1_ref[...].astype(jnp.float32), 0.0)
        h = h.astype(w2_ref.dtype)
        out = jnp.dot(h, w2_ref[...], preferred_element_type=jnp.float32)
        out = out + b2_ref[...].astype(jnp.float32)
        if res_ref is not None:                      # fused residual add (VPU filler)
            out = out + res_ref[...].astype(jnp.float32)
        o_ref[...] = out.astype(o_ref.dtype)

    return kernel


def _make_chunked_kernel(has_residual):
    """Hidden (Hp) axis chunked: weights stream through VMEM, f32 accumulator.
    Valid because H is the *output* dim of the first matmul, so ReLU can be
    applied per hidden-chunk before accumulating the second matmul over H."""

    def kernel(*refs):
        if has_residual:
            x_ref, w1_ref, b1_ref, w2_ref, b2_ref, res_ref, o_ref, acc_ref = refs
        else:
            x_ref, w1_ref, b1_ref, w2_ref, b2_ref, o_ref, acc_ref = refs
            res_ref = None
        k = pl.program_id(1)

        @pl.when(k == 0)
        def _():
            acc_ref[...] = jnp.zeros_like(acc_ref)

        h = jnp.dot(x_ref[...], w1_ref[...], preferred_element_type=jnp.float32)
        h = jnp.maximum(h + b1_ref[...].astype(jnp.float32), 0.0)
        h = h.astype(w2_ref.dtype)
        acc_ref[...] += jnp.dot(h, w2_ref[...], preferred_element_type=jnp.float32)

        @pl.when(k == pl.num_programs(1) - 1)
        def _():
            out = acc_ref[...] + b2_ref[...].astype(jnp.float32)
            if res_ref is not None:
                out = out + res_ref[...].astype(jnp.float32)
            o_ref[...] = out.astype(o_ref.dtype)

    return kernel


# -----------------------------------------------------------------------------
# Host-side wrappers
# -----------------------------------------------------------------------------
def prepare_ffn_params(w1, b1, w2, b2, dtype=None):
    """One-time parameter prep (kept OUT of the per-call hot path):
       * transpose PyTorch nn.Linear weights to row-major matmul layout,
       * zero-pad model/hidden dims to multiples of 128 (lane-dense),
       * optionally cast to the MXU-native dtype (e.g. bf16).
    Shapes (nn.Linear convention): w1 (H, D), b1 (H,), w2 (D, H), b2 (D,)."""
    H, D = w1.shape
    Dp, Hp = _round_up(D, 128), _round_up(H, 128)
    if dtype is not None:
        w1, b1, w2, b2 = (a.astype(dtype) for a in (w1, b1, w2, b2))
    w1t = jnp.zeros((Dp, Hp), w1.dtype).at[:D, :H].set(w1.T)
    b1p = jnp.zeros((1, Hp), b1.dtype).at[0, :H].set(b1)
    w2t = jnp.zeros((Hp, Dp), w2.dtype).at[:H, :D].set(w2.T)
    b2p = jnp.zeros((1, Dp), b2.dtype).at[0, :D].set(b2)
    return (w1t, b1p, w2t, b2p, D, H)


def feed_forward(x, params, *, residual=None, tm=512, force_chunked=False,
                 max_tk=None):
    """x: (..., model_dim). params: output of prepare_ffn_params().
    residual: optional tensor of x's shape, fused-added in the epilogue."""
    w1t, b1p, w2t, b2p, D, H = params
    Dp, Hp = w1t.shape
    w_itemsize = jnp.dtype(w1t.dtype).itemsize

    orig_shape = x.shape
    x2d = x.reshape(-1, orig_shape[-1])
    M = x2d.shape[0]
    itemsize = jnp.dtype(x.dtype).itemsize
    has_residual = residual is not None

    # ---- VMEM budget per TensorCore (generation-aware, with headroom) ----
    vmem_cap = _vmem_capacity_bytes()
    if vmem_cap >= (96 << 20):                      # v5e / v6e: 128 MiB parts
        vmem_budget = min(vmem_cap - (20 << 20), 110 << 20)
        inter_cap = 8 << 20
    else:                                           # v7x: 64 MiB per core
        vmem_budget = max(vmem_cap - (10 << 20), 32 << 20)
        inter_cap = 4 << 20

    # ---- Token-tile size (always a multiple of 8 for f32 / 16 for bf16) ----
    row_align = 8 if itemsize >= 4 else 16
    inter_itemsize = w_itemsize                     # h is held in weight dtype
    TM = _round_up(max(tm, row_align), row_align)
    while TM > row_align and TM * Hp * inter_itemsize > inter_cap:
        TM = _round_up(TM // 2, row_align)
    TM = min(TM, _round_up(M, row_align))
    # Avoid >25% zero-row padding on the last tile.
    while TM > row_align and 4 * (_round_up(M, TM) - M) > _round_up(M, TM):
        TM = _round_up(TM // 2, row_align)
    Mp = _round_up(M, TM)

    # ---- Zero-pad token rows / lane dim (sliced off at the end) ----
    def _pad_rows(a2d):
        if a2d.shape != (Mp, Dp):
            return jnp.zeros((Mp, Dp), a2d.dtype).at[:M, :D].set(a2d)
        return a2d

    xp = _pad_rows(x2d)
    resp = _pad_rows(residual.reshape(-1, orig_shape[-1])) if has_residual else None

    # ---- VMEM accounting & path selection ----
    w_bytes = (w1t.size + w2t.size + b1p.size + b2p.size) * w_itemsize
    stream_bytes = (3 if has_residual else 2) * 2 * TM * Dp * itemsize  # dbl-buffered x/out(/res)
    resident_est = w_bytes + stream_bytes + TM * Hp * inter_itemsize + TM * Dp * 4
    use_chunked = force_chunked or resident_est > 0.9 * vmem_budget

    cost = pl.CostEstimate(
        flops=4 * Mp * Dp * Hp,                     # two matmuls, 2 flops / MAC
        transcendentals=0,
        bytes_accessed=int(w_bytes + (3 if has_residual else 2) * Mp * Dp * itemsize),
    )

    if not use_chunked:
        # Weights/biases have a constant block index -> single-buffer them.
        const = dict(pipeline_mode=pl.Buffered(1))
        in_specs = [
            pl.BlockSpec((TM, Dp), lambda i: (i, 0)),          # x tile revolves
            pl.BlockSpec((Dp, Hp), lambda i: (0, 0), **const), # resident weights
            pl.BlockSpec((1, Hp), lambda i: (0, 0), **const),
            pl.BlockSpec((Hp, Dp), lambda i: (0, 0), **const),
            pl.BlockSpec((1, Dp), lambda i: (0, 0), **const),
        ]
        args = [xp, w1t, b1p, w2t, b2p]
        if has_residual:
            in_specs.append(pl.BlockSpec((TM, Dp), lambda i: (i, 0)))
            args.append(resp)
        vmem_limit = int(min(vmem_budget, max(2 * resident_est, 32 << 20)))
        out = pl.pallas_call(
            _make_resident_kernel(has_residual),
            out_shape=jax.ShapeDtypeStruct((Mp, Dp), x.dtype),
            grid_spec=pltpu.PrefetchScalarGridSpec(
                num_scalar_prefetch=0,
                grid=(Mp // TM,),
                in_specs=in_specs,
                out_specs=pl.BlockSpec((TM, Dp), lambda i: (i, 0)),
            ),
            compiler_params=pltpu.CompilerParams(
                dimension_semantics=("parallel",),   # megacore-shard token tiles
                vmem_limit_bytes=vmem_limit,
            ),
            cost_estimate=cost,
        )(*args)
    else:
        # K(hidden)-chunked path: weights stream through VMEM in (.., TK) slabs.
        def chunk_est(tk):
            return (2 * (2 * Dp * tk + tk) * w_itemsize   # dbl-buffered W1/W2/b1 chunks
                    + 2 * Dp * w_itemsize                 # b2
                    + stream_bytes
                    + TM * tk * inter_itemsize            # h chunk
                    + TM * Dp * 4)                        # f32 accumulator

        candidates = [t for t in (2048, 1024, 512, 256, 128)
                      if Hp % t == 0 and (max_tk is None or t <= max_tk)]
        TK = 128
        for t in candidates:
            if chunk_est(t) <= 0.9 * vmem_budget:
                TK = t
                break
        vmem_limit = int(min(vmem_budget, max(2 * chunk_est(TK), 32 << 20)))

        in_specs = [
            pl.BlockSpec((TM, Dp), lambda i, k: (i, 0)),   # x: constant over k
            pl.BlockSpec((Dp, TK), lambda i, k: (0, k)),   # W1 hidden-chunk
            pl.BlockSpec((1, TK), lambda i, k: (0, k)),    # b1 hidden-chunk
            pl.BlockSpec((TK, Dp), lambda i, k: (k, 0)),   # W2 hidden-chunk
            pl.BlockSpec((1, Dp), lambda i, k: (0, 0)),    # b2
        ]
        args = [xp, w1t, b1p, w2t, b2p]
        if has_residual:
            in_specs.append(pl.BlockSpec((TM, Dp), lambda i, k: (i, 0)))
            args.append(resp)
        out = pl.pallas_call(
            _make_chunked_kernel(has_residual),
            out_shape=jax.ShapeDtypeStruct((Mp, Dp), x.dtype),
            grid_spec=pltpu.PrefetchScalarGridSpec(
                num_scalar_prefetch=0,
                grid=(Mp // TM, Hp // TK),
                in_specs=in_specs,
                out_specs=pl.BlockSpec((TM, Dp), lambda i, k: (i, 0)),
                scratch_shapes=[pltpu.VMEM((TM, Dp), jnp.float32)],
            ),
            compiler_params=pltpu.CompilerParams(
                dimension_semantics=("parallel", "arbitrary"),
                vmem_limit_bytes=vmem_limit,
            ),
            cost_estimate=cost,
        )(*args)

    return out[:M, :D].reshape(orig_shape)


if __name__ == "__main__":
    key = jax.random.PRNGKey(0)
    batch, seq = 2, 8

    # ---- Test 1: bf16, resident-weight path, fused residual (x + FFN(x)) ----
    model_dim, hidden_dim = 32, 64
    kx, k1, k2, k3, k4, knext = jax.random.split(key, 6)
    x = jax.random.normal(kx, (batch, seq, model_dim), dtype=jnp.float32)
    # nn.Linear conventions: weight (out, in), bias (out,)
    w1 = jax.random.normal(k1, (hidden_dim, model_dim), dtype=jnp.float32) * 0.05
    b1 = jax.random.normal(k2, (hidden_dim,), dtype=jnp.float32) * 0.05
    w2 = jax.random.normal(k3, (model_dim, hidden_dim), dtype=jnp.float32) * 0.05
    b2 = jax.random.normal(k4, (model_dim,), dtype=jnp.float32) * 0.05

    xb = x.astype(jnp.bfloat16)
    params = prepare_ffn_params(w1, b1, w2, b2, dtype=jnp.bfloat16)
    out = feed_forward(xb, params, residual=xb)
    jax.block_until_ready(out)

    xr = xb.astype(jnp.float32)
    w1r = w1.astype(jnp.bfloat16).astype(jnp.float32)
    b1r = b1.astype(jnp.bfloat16).astype(jnp.float32)
    w2r = w2.astype(jnp.bfloat16).astype(jnp.float32)
    b2r = b2.astype(jnp.bfloat16).astype(jnp.float32)
    ref = xr + (jnp.maximum(xr @ w1r.T + b1r, 0.0) @ w2r.T + b2r)
    assert out.shape == x.shape and out.dtype == jnp.bfloat16
    err1 = jnp.max(jnp.abs(out.astype(jnp.float32) - ref))
    assert err1 < 2e-2, f"test1 max abs err {err1}"

    # ---- Test 2: f32, forced hidden-chunked path (v7x large-width fallback) ----
    model_dim2, hidden_dim2 = 48, 200            # Hp = 256, TK = 128 -> 2 k-steps
    ky, q1, q2, q3, q4 = jax.random.split(knext, 5)
    y = jax.random.normal(ky, (batch, seq, model_dim2), dtype=jnp.float32)
    v1 = jax.random.normal(q1, (hidden_dim2, model_dim2), dtype=jnp.float32) * 0.05
    c1 = jax.random.normal(q2, (hidden_dim2,), dtype=jnp.float32) * 0.05
    v2 = jax.random.normal(q3, (model_dim2, hidden_dim2), dtype=jnp.float32) * 0.05
    c2 = jax.random.normal(q4, (model_dim2,), dtype=jnp.float32) * 0.05

    params2 = prepare_ffn_params(v1, c1, v2, c2)
    out2 = feed_forward(y, params2, force_chunked=True, max_tk=128)
    jax.block_until_ready(out2)
    ref2 = jnp.maximum(y.reshape(-1, model_dim2) @ v1.T + c1, 0.0) @ v2.T + c2
    ref2 = ref2.reshape(y.shape)
    assert out2.shape == y.shape
    err2 = jnp.max(jnp.abs(out2 - ref2))
    assert err2 < 2e-2, f"test2 max abs err {err2}"

    print("KERNEL_OK")
</pallas_src>

<mosaic_0001>
module attributes {stable_mosaic.version = 11 : i64} {
  func.func @kernel(%arg0: i32, %arg1: memref<16x128xbf16, #tpu.memory_space<vmem>>, %arg2: memref<128x128xbf16, #tpu.memory_space<vmem>>, %arg3: memref<1x128xbf16, #tpu.memory_space<vmem>>, %arg4: memref<128x128xbf16, #tpu.memory_space<vmem>>, %arg5: memref<1x128xbf16, #tpu.memory_space<vmem>>, %arg6: memref<16x128xbf16, #tpu.memory_space<vmem>>, %arg7: memref<16x128xbf16, #tpu.memory_space<vmem>>) attributes {dimension_semantics = [#tpu.dimension_semantics<parallel>], iteration_bounds = array<i64: 1>, scalar_prefetch = 0 : i64, scratch_operands = 0 : i64, tpu.core_type = #tpu.core_type<tc>, window_params = [{transform_indices = @transform_0, window_bounds = array<i64: 16, 128>}, {pipeline_mode = #tpu.pipeline_mode<synchronous>, transform_indices = @transform_1, window_bounds = array<i64: 128, 128>}, {pipeline_mode = #tpu.pipeline_mode<synchronous>, transform_indices = @transform_2, window_bounds = array<i64: 1, 128>}, {pipeline_mode = #tpu.pipeline_mode<synchronous>, transform_indices = @transform_3, window_bounds = array<i64: 128, 128>}, {pipeline_mode = #tpu.pipeline_mode<synchronous>, transform_indices = @transform_4, window_bounds = array<i64: 1, 128>}, {transform_indices = @transform_5, window_bounds = array<i64: 16, 128>}, {transform_indices = @transform_6, window_bounds = array<i64: 16, 128>}]} {
    %c0 = arith.constant 0 : index
    %c0_0 = arith.constant 0 : index
    %0 = vector.load %arg1[%c0, %c0_0] : memref<16x128xbf16, #tpu.memory_space<vmem>>, vector<16x128xbf16>
    %c0_1 = arith.constant 0 : index
    %c0_2 = arith.constant 0 : index
    %1 = vector.load %arg2[%c0_1, %c0_2] : memref<128x128xbf16, #tpu.memory_space<vmem>>, vector<128x128xbf16>
    %cst = arith.constant dense<0.000000e+00> : vector<16x128xf32>
    %2 = tpu.matmul %0, %1, %cst {dimension_numbers = #tpu.dot_dimension_numbers<[1], [0], [0], [1], [0, 0, 1, 1], [], []>} : vector<16x128xbf16>, vector<128x128xbf16>, vector<16x128xf32> -> vector<16x128xf32>
    %c0_3 = arith.constant 0 : index
    %c0_4 = arith.constant 0 : index
    %3 = vector.load %arg3[%c0_3, %c0_4] : memref<1x128xbf16, #tpu.memory_space<vmem>>, vector<1x128xbf16>
    %4 = arith.extf %3 : vector<1x128xbf16> to vector<1x128xf32>
    %5 = vector.broadcast %4 : vector<1x128xf32> to vector<16x128xf32>
    %6 = arith.addf %2, %5 : vector<16x128xf32>
    %cst_5 = arith.constant 0.000000e+00 : f32
    %7 = vector.broadcast %cst_5 : f32 to vector<16x128xf32>
    %8 = arith.maximumf %6, %7 : vector<16x128xf32>
    %9 = arith.truncf %8 : vector<16x128xf32> to vector<16x128xbf16>
    %c0_6 = arith.constant 0 : index
    %c0_7 = arith.constant 0 : index
    %10 = vector.load %arg4[%c0_6, %c0_7] : memref<128x128xbf16, #tpu.memory_space<vmem>>, vector<128x128xbf16>
    %cst_8 = arith.constant dense<0.000000e+00> : vector<16x128xf32>
    %11 = tpu.matmul %9, %10, %cst_8 {dimension_numbers = #tpu.dot_dimension_numbers<[1], [0], [0], [1], [0, 0, 1, 1], [], []>} : vector<16x128xbf16>, vector<128x128xbf16>, vector<16x128xf32> -> vector<16x128xf32>
    %c0_9 = arith.constant 0 : index
    %c0_10 = arith.constant 0 : index
    %12 = vector.load %arg5[%c0_9, %c0_10] : memref<1x128xbf16, #tpu.memory_space<vmem>>, vector<1x128xbf16>
    %13 = arith.extf %12 : vector<1x128xbf16> to vector<1x128xf32>
    %14 = vector.broadcast %13 : vector<1x128xf32> to vector<16x128xf32>
    %15 = arith.addf %11, %14 : vector<16x128xf32>
    %c0_11 = arith.constant 0 : index
    %c0_12 = arith.constant 0 : index
    %16 = vector.load %arg6[%c0_11, %c0_12] : memref<16x128xbf16, #tpu.memory_space<vmem>>, vector<16x128xbf16>
    %17 = arith.extf %16 : vector<16x128xbf16> to vector<16x128xf32>
    %18 = arith.addf %15, %17 : vector<16x128xf32>
    %19 = arith.truncf %18 : vector<16x128xf32> to vector<16x128xbf16>
    %c0_13 = arith.constant 0 : index
    %c0_14 = arith.constant 0 : index
    %20 = vector.load %arg7[%c0_13, %c0_14] : memref<16x128xbf16, #tpu.memory_space<vmem>>, vector<16x128xbf16>
    tpu.vector_store %arg7[%c0_13, %c0_14], %19 {strides = array<i32>} : memref<16x128xbf16, #tpu.memory_space<vmem>>, vector<16x128xbf16>,
    return
  }
  func.func @transform_0(%arg0: i32) -> (i32, i32) {
    %c0_i32 = arith.constant 0 : i32
    %c0_i32_0 = arith.constant 0 : i32
    return %arg0, %c0_i32 : i32, i32
  }
  func.func @transform_1(%arg0: i32) -> (i32, i32) {
    %c0_i32 = arith.constant 0 : i32
    %c0_i32_0 = arith.constant 0 : i32
    %c0_i32_1 = arith.constant 0 : i32
    return %c0_i32, %c0_i32_0 : i32, i32
  }
  func.func @transform_2(%arg0: i32) -> (i32, i32) {
    %c0_i32 = arith.constant 0 : i32
    %c0_i32_0 = arith.constant 0 : i32
    %c0_i32_1 = arith.constant 0 : i32
    return %c0_i32, %c0_i32_0 : i32, i32
  }
  func.func @transform_3(%arg0: i32) -> (i32, i32) {
    %c0_i32 = arith.constant 0 : i32
    %c0_i32_0 = arith.constant 0 : i32
    %c0_i32_1 = arith.constant 0 : i32
    return %c0_i32, %c0_i32_0 : i32, i32
  }
  func.func @transform_4(%arg0: i32) -> (i32, i32) {
    %c0_i32 = arith.constant 0 : i32
    %c0_i32_0 = arith.constant 0 : i32
    %c0_i32_1 = arith.constant 0 : i32
    return %c0_i32, %c0_i32_0 : i32, i32
  }
  func.func @transform_5(%arg0: i32) -> (i32, i32) {
    %c0_i32 = arith.constant 0 : i32
    %c0_i32_0 = arith.constant 0 : i32
    return %arg0, %c0_i32 : i32, i32
  }
  func.func @transform_6(%arg0: i32) -> (i32, i32) {
    %c0_i32 = arith.constant 0 : i32
    %c0_i32_0 = arith.constant 0 : i32
    return %arg0, %c0_i32 : i32, i32
  }
}

</mosaic_0001>

<bundles_post_ra>
// kernel: tpu_custom_call.1
= control target key start
LH: loop header
LB: loop body
LE: loop exit
PB: predicated region body
PF: predicated region fallthrough
CT: control target
= control target key end

     0   :  { %11 = vsyncpa [#allocation3], 0  ;;  %s659_s0 = inlined_call_operand.hbm [shape: bf16[16,128], index: 0, kind: input, shape index: {}]   ;;  %s660_s1 = inlined_call_operand.hbm [shape: bf16[128,128], index: 1, kind: input, shape index: {}]   ;;  %s661_s2 = inlined_call_operand.vmem [shape: bf16[1,128], index: 2, kind: input, shape index: {}]   ;;  %s662_s3 = inlined_call_operand.hbm [shape: bf16[128,128], index: 3, kind: input, shape index: {}]   ;;  %s663_s4 = inlined_call_operand.vmem [shape: bf16[1,128], index: 4, kind: input, shape index: {}]   ;;  %s664_s5 = inlined_call_operand.vmem [shape: bf16[16,128], index: 5, kind: input, shape index: {}]   ;;  %s665_s6 = inlined_call_operand.hbm [shape: bf16[16,128], index: 6, kind: output, shape index: {}]  }
   0x1   :  { %12 = vsyncpa [#allocation6], 0 }
   0x2   :  { %13 = vsyncpa [#allocation4], 0  ;;  %s540_s21 = smov [#allocation5]   ;;  %s541_s23 = smov [#allocation2]  }
   0x3   :  { %s31_s22 = sshll.u32 %s540_s21, 4  ;;  %s19_s24 = sshll.u32 %s541_s23, 4  ;;  %s32_s22 = int_to_ptr.vmem [resolvable:$true] %s31_s22  ;;  %s583_s24 = int_to_ptr.vmem [resolvable:$true] %s19_s24 }
   0x4   :  { %s446_s27 = scalar_lea.hbm %s660_s1, 1024 }
   0x5   :  { %p447_p0 = scmp.ne.s32.totalorder %s660_s1, %s446_s27  ;;  %p450_p1 = scmp.lt.u32.totalorder %s446_s27, %s660_s1 }
   0x7   :  { %p452_p2 = pnand %p450_p1, %p447_p0 }
   0x9   :  { %455 = shalt.err (!%p452_p2)
}
   0xa   :  { %s456_s8 = scalar_lea.vmem %s32_s22, 1024  ;;  %p461_p4 = scmp.lt.s32.totalorder %s32_s22, %s32_s22 }
   0xb   :  { %p457_p3 = scmp.ne.s32.totalorder %s32_s22, %s456_s8  ;;  %p462_p5 = scmp.lt.s32.totalorder %s456_s8, %s456_s8 }
   0xd   :  { %p463_p6 = por %p462_p5, %p461_p4 }
   0xf   :  { %p464_p7 = pnand %p463_p6, %p457_p3 }
  0x11   :  { %467 = shalt.err (!%p464_p7)
}
  0x12   :  { %s542_s9 = smov 64   ;;  %s543_s10 = smov 4  }
  0x13   :  { %37 = dma.hbm_to_vmem [thread:$0]  %s660_s1, 1024, %s32_s22, [#allocation6], %s542_s9, %s542_s9, %s543_s10  }
  0x14   :  { %s468_s15 = scalar_lea.hbm %s659_s0, 128 }
  0x15   :  { %p469_p8 = scmp.ne.s32.totalorder %s659_s0, %s468_s15  ;;  %p472_p9 = scmp.lt.u32.totalorder %s468_s15, %s659_s0 }
  0x17   :  { %p474_p10 = pnand %p472_p9, %p469_p8 }
  0x19   :  { %477 = shalt.err (!%p474_p10)
}
  0x1a   :  { %s478_s20 = scalar_lea.vmem %s583_s24, 128  ;;  %p483_p12 = scmp.lt.s32.totalorder %s583_s24, %s583_s24 }
  0x1b   :  { %p479_p11 = scmp.ne.s32.totalorder %s583_s24, %s478_s20  ;;  %p484_p13 = scmp.lt.s32.totalorder %s478_s20, %s478_s20 }
  0x1d   :  { %p485_p0 = por %p484_p13, %p483_p12 }
  0x1f   :  { %p486_p1 = pnand %p485_p0, %p479_p11 }
  0x21   :  { %489 = shalt.err (!%p486_p1)
}
  0x22   :  { %25 = dma.hbm_to_vmem [thread:$0]  %s659_s0, 128, %s583_s24, [#allocation3], %s542_s9, %s542_s9, %s543_s10  }
  0x23   :  { %s544_s22 = smov [#allocation7]   ;;  %s490_s27 = scalar_lea.hbm %s662_s3, 1024 }
  0x24   :  { %s45_s23 = sshll.u32 %s544_s22, 4  ;;  %p491_p2 = scmp.ne.s32.totalorder %s662_s3, %s490_s27  ;;  %s46_s23 = int_to_ptr.vmem [resolvable:$true] %s45_s23 }
  0x25   :  { %p494_p3 = scmp.lt.u32.totalorder %s490_s27, %s662_s3 }
  0x27   :  { %p496_p4 = pnand %p494_p3, %p491_p2 }
  0x29   :  { %499 = shalt.err (!%p496_p4)
}
  0x2a   :  { %s500_s8 = scalar_lea.vmem %s46_s23, 1024  ;;  %p505_p6 = scmp.lt.s32.totalorder %s46_s23, %s46_s23 }
  0x2b   :  { %p501_p5 = scmp.ne.s32.totalorder %s46_s23, %s500_s8  ;;  %p506_p7 = scmp.lt.s32.totalorder %s500_s8, %s500_s8 }
  0x2d   :  { %p507_p8 = por %p506_p7, %p505_p6 }
  0x2f   :  { %p508_p9 = pnand %p507_p8, %p501_p5 }
  0x31   :  { %511 = shalt.err (!%p508_p9)
}
  0x32   :  { %51 = dma.hbm_to_vmem [thread:$0]  %s662_s3, 1024, %s46_s23, [#allocation6], %s542_s9, %s542_s9, %s543_s10  }
  0x33   :  { %534 = dma.done.wait [#allocation3], 128  }
  0x34   :  { %535 = vsyncadd [#allocation3], 4294967168 }
  0x35   :  { %536 = dma.done.wait [#allocation6], 2048  }
  0x36   :  { %537 = vsyncadd [#allocation6], 4294965248  ;;  %v545_v0 = vmov 0.0   ;;  %vm546_vm0 = vmmov 0   ;;  %v429_v1 = vld [vmem:[#allocation5] sm:$0xff]   ;;  %v430_v2 = vld [vmem:[#allocation5 + $0x8] sm:$0xff]   ;;  %v86_v18 = vlaneseq }
  0x37   :  { %381 = vmatprep.subr.bf16.mxu0 %v545_v0  ;;  %397 = vmatprep.mubr.msk.bf16.mxu0 %vm546_vm0, %v545_v0  ;;  %v431_v3 = vld [vmem:[#allocation5 + $0x10] sm:$0xff]   ;;  %v438_v4 = vld [vmem:[#allocation7] sm:$0xff]   ;;  %v432_v5 = vld [vmem:[#allocation5 + $0x18] sm:$0xff]   ;;  %s547_s15 = smov [#allocation8]  }
  0x38   :  { %401 = vmatprep.subr.bf16.mxu1 %v545_v0  ;;  %417 = vmatprep.mubr.msk.bf16.mxu1 %vm546_vm0, %v545_v0  ;;  %v439_v6 = vld [vmem:[#allocation7 + $0x8] sm:$0xff]   ;;  %v433_v7 = vld [vmem:[#allocation5 + $0x20] sm:$0xff]   ;;  %v440_v8 = vld [vmem:[#allocation7 + $0x10] sm:$0xff]   ;;  %v87_v19 = vshrl.u32 %v86_v18, 7  ;;  %s320_s16 = sshll.u32 %s547_s15, 4  ;;  %s321_s16 = int_to_ptr.vmem [resolvable:$true] %s320_s16 }
  0x39   :  { %382 = vmatpush3.bf16.msra.mxu0 %v429_v1  ;;  %402 = vmatpush3.bf16.msra.mxu1 %v438_v4  ;;  %v434_v9 = vld [vmem:[#allocation5 + $0x28] sm:$0xff]   ;;  %v441_v10 = vld [vmem:[#allocation7 + $0x18] sm:$0xff]   ;;  %v435_v11 = vld [vmem:[#allocation5 + $0x30] sm:$0xff]   ;;  %p517_p11 = scmp.lt.s32.totalorder %s321_s16, %s321_s16 }
  0x3a   :  { %383 = vmatprep.subr.bf16.mxu0 %v545_v0  ;;  %403 = vmatprep.subr.bf16.mxu1 %v545_v0  ;;  %v442_v12 = vld [vmem:[#allocation7 + $0x20] sm:$0xff]   ;;  %v436_v13 = vld [vmem:[#allocation5 + $0x38] sm:$0xff]   ;;  %v443_v14 = vld [vmem:[#allocation7 + $0x28] sm:$0xff]   ;;  %v88_v22 = vsub.s32 0, %v87_v19 }
  0x3b   :  { %v437_v15 = vld [vmem:[#allocation2] sm:$0xff]   ;;  %v444_v16 = vld [vmem:[#allocation7 + $0x30] sm:$0xff]  }
  0x3c   :  { %v445_v17 = vld [vmem:[#allocation7 + $0x38] sm:$0xff]  }
  0x3d   :  { %384 = vmatpush3.bf16.msra.mxu0 %v430_v2  ;;  %404 = vmatpush3.bf16.msra.mxu1 %v439_v6  ;;  %v84_v20 = vld [vmem:[%s661_s2] sm:$0x1] }
  0x3e   :  { %385 = vmatprep.subr.bf16.mxu0 %v545_v0  ;;  %405 = vmatprep.subr.bf16.mxu1 %v545_v0  ;;  %v85_v21 = vunpack.c.l.bf16 %v84_v20  ;;  %v204_v33 = vld [vmem:[%s663_s4] sm:$0x1]  ;;  %s512_s4 = scalar_lea.vmem %s321_s16, 128 }
  0x3f   :  { %v205_v34 = vunpack.c.l.bf16 %v204_v33  ;;  %v355_v36 = vld [vmem:[%s664_s5] sm:$0xff]   ;;  %p513_p10 = scmp.ne.s32.totalorder %s321_s16, %s512_s4  ;;  %p518_p12 = scmp.lt.s32.totalorder %s512_s4, %s512_s4 }
  0x40   :  { %v89_v23 = vrot.slane %v85_v21, %v88_v22  ;;  %v356_v39 = vunpack.c.l.bf16 %v355_v36  ;;  %v357_v41 = vunpack.c.h.bf16 %v355_v36 }
  0x41   :  { %386 = vmatpush3.bf16.msra.mxu0 %v431_v3  ;;  %406 = vmatpush3.bf16.msra.mxu1 %v440_v8  ;;  %v209_v35 = vrot.slane %v205_v34, %v88_v22  ;;  %p519_p13 = por %p518_p12, %p517_p11 }
  0x42   :  { %387 = vmatprep.subr.bf16.mxu0 %v545_v0  ;;  %407 = vmatprep.subr.bf16.mxu1 %v545_v0 }
  0x43   :  { %p520_p0 = pnand %p519_p13, %p513_p10 }
  0x45   :  { %388 = vmatpush3.bf16.msra.mxu0 %v432_v5  ;;  %408 = vmatpush3.bf16.msra.mxu1 %v441_v10 }
  0x46   :  { %389 = vmatprep.subr.bf16.mxu0 %v545_v0  ;;  %409 = vmatprep.subr.bf16.mxu1 %v545_v0 }
  0x49   :  { %390 = vmatpush3.bf16.msra.mxu0 %v433_v7  ;;  %410 = vmatpush3.bf16.msra.mxu1 %v442_v12 }
  0x4a   :  { %391 = vmatprep.subr.bf16.mxu0 %v545_v0  ;;  %411 = vmatprep.subr.bf16.mxu1 %v545_v0 }
  0x4d   :  { %392 = vmatpush3.bf16.msra.mxu0 %v434_v9  ;;  %412 = vmatpush3.bf16.msra.mxu1 %v443_v14 }
  0x4e   :  { %393 = vmatprep.subr.bf16.mxu0 %v545_v0  ;;  %413 = vmatprep.subr.bf16.mxu1 %v545_v0 }
  0x51   :  { %394 = vmatpush3.bf16.msra.mxu0 %v435_v11  ;;  %414 = vmatpush3.bf16.msra.mxu1 %v444_v16 }
  0x52   :  { %395 = vmatprep.subr.bf16.mxu0 %v545_v0  ;;  %415 = vmatprep.subr.bf16.mxu1 %v545_v0 }
  0x55   :  { %396 = vmatpush3.bf16.msra.mxu0 %v436_v13  ;;  %416 = vmatpush3.bf16.msra.mxu1 %v445_v17 }
  0x58   :  { %398 = vmatmul.mubr.bf16.vlgmr.msra.gmra.mrb[0].mxu0 %v437_v15 }
 0x12b   :  { %v178_v24 = vpop.f32.mrb[0].mxu0 }
 0x12c   :  { %v179_v25 = vadd.f32 %v178_v24, %v89_v23  ;;  %v399_v26 = vpop.f32.mrb[1].mxu0 }
 0x12d   :  { %v181_v27 = vpop.f32.mrb[2].mxu0 }
 0x12e   :  { %v182_v28 = vadd.f32 %v181_v27, %v89_v23  ;;  %v400_v29 = vpop.f32.mrb[3].mxu0  ;;  %v185_v30 = vmax.f32 %v179_v25, 0.0 }
 0x130   :  { %v186_v31 = vmax.f32 %v182_v28, 0.0 }
 0x132   :  { %v187_v32 = vpack.c.bf16 %v186_v31, %v185_v30 }
 0x134   :  { %418 = vmatmul.mubr.bf16.vlgmr.msra.gmra.mrb[0].mxu1 %v187_v32 }
 0x207   :  { %v292_v37 = vpop.f32.mrb[0].mxu1 }
 0x208   :  { %v293_v38 = vadd.f32 %v292_v37, %v209_v35  ;;  %v419_v40 = vpop.f32.mrb[1].mxu1 }
 0x209   :  { %v295_v42 = vpop.f32.mrb[2].mxu1 }
 0x20a   :  { %v296_v43 = vadd.f32 %v295_v42, %v209_v35  ;;  %v420_v44 = vpop.f32.mrb[3].mxu1  ;;  %v303_v45 = vadd.f32 %v356_v39, %v293_v38 }
 0x20c   :  { %v304_v46 = vadd.f32 %v357_v41, %v296_v43 }
 0x20e   :  { %v361_v47 = vpack.c.bf16 %v304_v46, %v303_v45 }
 0x210   :  { %362 = vst [vmem:[#allocation8] sm:$0xff] %v361_v47  }
 0x211   :  { %523 = shalt.err (!%p520_p0)
}
 0x212   :  { %s524_s18 = scalar_lea.hbm %s665_s6, 128 }
 0x213   :  { %p525_p1 = scmp.ne.s32.totalorder %s665_s6, %s524_s18  ;;  %p528_p2 = scmp.lt.u32.totalorder %s524_s18, %s665_s6 }
 0x215   :  { %p530_p3 = pnand %p528_p2, %p525_p1 }
 0x217   :  { %533 = shalt.err (!%p530_p3)
}
 0x218   :  { %326 = dma.vmem_to_hbm [thread:$0]  %s321_s16, 128, %s665_s6, [#allocation4], %s542_s9, %s542_s9, %s543_s10  }
 0x219   :  { %538 = dma.done.wait [#allocation4], 128  }
 0x21a   :  { %539 = vsyncadd [#allocation4], 4294967168 }
 0x21b   :  { %330 = vsyncpa [#allocation3], 1 }
 0x21c   :  { %331 = vsyncpa [#allocation6], 1 }
 0x21d   :  { %332 = vsyncpa [#allocation4], 1 }

</bundles_post_ra>
